<compile_context>
chip_gen: v7x
topology: tpu7x:2x2x1
jax: 0.10.0
libtpu: 0.0.40
codegen_flags: <defaults>
</compile_context>

<pallas_src>
import math
import jax
import jax.numpy as jnp
from jax import lax
from jax.experimental import pallas as pl
from jax.experimental.pallas import tpu as pltpu


def _round_up(x, m):
    return ((x + m - 1) // m) * m


def _make_atom_encoder_kernel(n_cat_used, offsets, scalar_start, has_scalar, v_pad):
    """Builds the fused kernel body; all config is baked in as Python constants."""

    def _body(x_ref, table_ref, out_ref, w_ref, b_ref):
        x = x_ref[...]                                     # [TN, F] raw features (f32)
        tn = x.shape[0]

        # Multi-hot selector over the fused (padded) vocab: boolean OR per categorical
        # feature, cast to f32 once.  Valid because offset vocab ranges are disjoint.
        vocab_ids = lax.broadcasted_iota(jnp.int32, (tn, v_pad), 1)
        acc = None
        for i in range(n_cat_used):                        # tiny static loop over cat feats
            idx = jnp.round(x[:, i:i + 1]).astype(jnp.int32) + offsets[i]   # [TN, 1]
            hit = vocab_ids == idx
            acc = hit if acc is None else jnp.logical_or(acc, hit)
        multihot = acc.astype(jnp.float32)                 # [TN, V_pad]

        # Sum of embedding lookups == multihot @ fused_table  (one MXU matmul).
        out = jnp.dot(multihot, table_ref[...], preferred_element_type=jnp.float32)

        if has_scalar:
            xs = x[:, scalar_start:]                       # [TN, S]
            out = out + jnp.dot(xs, w_ref[...], preferred_element_type=jnp.float32) + b_ref[...]

        out_ref[...] = out                                 # lane-dense [TN, E_pad] store

    if has_scalar:
        def kernel(x_ref, table_ref, w_ref, b_ref, out_ref):
            _body(x_ref, table_ref, out_ref, w_ref, b_ref)
    else:
        def kernel(x_ref, table_ref, out_ref):
            _body(x_ref, table_ref, out_ref, None, None)
    return kernel


class AtomEncoderPallas:
    """JAX/Pallas port of AtomEncoder with deterministic in-script parameter init."""

    # NOTE: the multi-hot matmul costs O(N * V_total * E) MXU flops regardless of the
    # number of categorical features.  For OGB-sized vocabs (V_total ~ a few hundred)
    # this is negligible; if any single vocab grows to the thousands, switch that
    # feature to a DMA gather (pl.ANY table + make_async_copy) instead.
    # TODO(synk): add gather path for very large vocabularies.

    def __init__(self, emb_dim, feature_dims, use_scalar_feat=True, n_feats_to_use=None,
                 key=jax.random.PRNGKey(0), tile_n=1024):
        self.emb_dim = emb_dim
        self.use_scalar_feat = use_scalar_feat
        self.n_feats_to_use = n_feats_to_use
        self.num_categorical_features = len(feature_dims[0])
        self.num_scalar_features = feature_dims[1]
        # 1024-row tiles are a good default for v6e/v7x; still fine on v5e for these
        # small V_pad/E_pad footprints.
        self._tile_n = tile_n

        # Which categorical features actually get an embedding table (mirrors torch loop).
        self.cat_dims = []
        for i, dim in enumerate(feature_dims[0]):
            self.cat_dims.append(dim)
            if i + 1 == self.n_feats_to_use:
                break
        self.n_cat_used = len(self.cat_dims)

        # Xavier-uniform embedding tables, concatenated along the vocab axis,
        # then zero-padded so V and E are multiples of 128 (clean MXU / lane tiles).
        tables = []
        for dim in self.cat_dims:
            key, sub = jax.random.split(key)
            bound = math.sqrt(6.0 / (dim + emb_dim))
            tables.append(jax.random.uniform(sub, (dim, emb_dim), jnp.float32, -bound, bound))
        fused = jnp.concatenate(tables, axis=0)                         # [V_total, E]
        self.v_total = fused.shape[0]
        self.v_pad = _round_up(self.v_total, 128)
        self.e_pad = _round_up(emb_dim, 128)
        self.table_pad = jnp.pad(fused, ((0, self.v_pad - self.v_total),
                                         (0, self.e_pad - emb_dim)))    # [V_pad, E_pad]

        offs = [0]
        for d in self.cat_dims[:-1]:
            offs.append(offs[-1] + d)
        self.offsets = offs                                             # python ints (static)

        # Linear(num_scalar_features, emb_dim) with PyTorch default init (E padded).
        self.has_scalar = (self.num_scalar_features > 0) and self.use_scalar_feat
        if self.num_scalar_features > 0:
            key, kw, kb = jax.random.split(key, 3)
            bound = 1.0 / math.sqrt(self.num_scalar_features)
            W = jax.random.uniform(kw, (self.num_scalar_features, emb_dim),
                                   jnp.float32, -bound, bound)
            b = jax.random.uniform(kb, (1, emb_dim), jnp.float32, -bound, bound)
            self.W_pad = jnp.pad(W, ((0, 0), (0, self.e_pad - emb_dim)))   # [S, E_pad]
            self.b_pad = jnp.pad(b, ((0, 0), (0, self.e_pad - emb_dim)))   # [1, E_pad]
        else:
            self.W_pad = None
            self.b_pad = None

        self._kernel = _make_atom_encoder_kernel(
            n_cat_used=self.n_cat_used,
            offsets=self.offsets,
            scalar_start=self.num_categorical_features,
            has_scalar=self.has_scalar,
            v_pad=self.v_pad,
        )
        self._forward_jit = jax.jit(self._forward)

    # ---- forward -------------------------------------------------------------

    def _forward(self, x):
        x = x.astype(jnp.float32)
        N, F = x.shape

        tile_n = min(self._tile_n, _round_up(N, 8))
        n_pad = _round_up(N, tile_n)
        if n_pad != N:
            x = jnp.pad(x, ((0, n_pad - N), (0, 0)))
        grid = (n_pad // tile_n,)

        in_specs = [
            pl.BlockSpec((tile_n, F), lambda i: (i, 0)),                  # row tile of raw x
            pl.BlockSpec((self.v_pad, self.e_pad), lambda i: (0, 0)),     # resident table
        ]
        args = [x, self.table_pad]
        if self.has_scalar:
            in_specs += [
                pl.BlockSpec((self.num_scalar_features, self.e_pad), lambda i: (0, 0)),
                pl.BlockSpec((1, self.e_pad), lambda i: (0, 0)),
            ]
            args += [self.W_pad, self.b_pad]

        flops = 2 * n_pad * self.v_pad * self.e_pad
        bytes_accessed = (x.size + self.table_pad.size + n_pad * self.e_pad) * 4
        if self.has_scalar:
            flops += 2 * n_pad * self.num_scalar_features * self.e_pad
            bytes_accessed += (self.W_pad.size + self.b_pad.size) * 4
        cost = pl.CostEstimate(flops=flops, transcendentals=0,
                               bytes_accessed=bytes_accessed)

        out = pl.pallas_call(
            self._kernel,
            out_shape=jax.ShapeDtypeStruct((n_pad, self.e_pad), jnp.float32),
            grid=grid,
            in_specs=in_specs,
            out_specs=pl.BlockSpec((tile_n, self.e_pad), lambda i: (i, 0)),
            compiler_params=pltpu.CompilerParams(dimension_semantics=("parallel",)),
            cost_estimate=cost,
        )(*args)

        return out[:N, :self.emb_dim]

    def __call__(self, x):
        assert x.shape[1] == self.num_categorical_features + self.num_scalar_features
        return self._forward_jit(x)

    # ---- pure-JAX reference for validation ------------------------------------

    def reference(self, x):
        x = x.astype(jnp.float32)
        table = self.table_pad[:self.v_total, :self.emb_dim]
        out = jnp.zeros((x.shape[0], self.emb_dim), jnp.float32)
        off = 0
        for i, d in enumerate(self.cat_dims):
            idx = jnp.round(x[:, i]).astype(jnp.int32)
            out = out + table[off + idx]
            off += d
        if self.has_scalar:
            xs = x[:, self.num_categorical_features:]
            out = out + xs @ self.W_pad[:, :self.emb_dim] + self.b_pad[:, :self.emb_dim]
        return out


if __name__ == "__main__":
    key = jax.random.PRNGKey(0)

    # Small synthetic config: 3 categorical features with vocab sizes (5, 7, 3),
    # 4 scalar features, emb_dim = 32, N = 8 atoms.
    feature_dims = ([5, 7, 3], 4)
    emb_dim = 32
    N = 8

    enc = AtomEncoderPallas(emb_dim, feature_dims, use_scalar_feat=True,
                            n_feats_to_use=None, key=jax.random.PRNGKey(0))

    k_cat, k_scal = jax.random.split(key)
    cat_part = jnp.stack(
        [jax.random.randint(jax.random.fold_in(k_cat, i), (N,), 0, d).astype(jnp.float32)
         for i, d in enumerate(feature_dims[0])], axis=1)                       # [N, 3]
    scal_part = jax.random.normal(k_scal, (N, feature_dims[1]), jnp.float32)    # [N, 4]
    x = jnp.concatenate([cat_part, scal_part], axis=1)                          # [N, 7]

    out = enc(x)
    out = jax.block_until_ready(out)

    ref = enc.reference(x)
    assert out.shape == (N, emb_dim)
    assert jnp.allclose(out, ref, atol=1e-5, rtol=1e-5), "mismatch vs reference"

    print("KERNEL_OK")
</pallas_src>

<mosaic_0001>
module attributes {stable_mosaic.version = 11 : i64} {
  func.func @kernel(%arg0: i32, %arg1: memref<8x7xf32, #tpu.memory_space<vmem>>, %arg2: memref<128x128xf32, #tpu.memory_space<vmem>>, %arg3: memref<4x128xf32, #tpu.memory_space<vmem>>, %arg4: memref<1x128xf32, #tpu.memory_space<vmem>>, %arg5: memref<8x128xf32, #tpu.memory_space<vmem>>) attributes {dimension_semantics = [#tpu.dimension_semantics<parallel>], iteration_bounds = array<i64: 1>, scalar_prefetch = 0 : i64, scratch_operands = 0 : i64, tpu.core_type = #tpu.core_type<tc>, window_params = [{transform_indices = @transform_0, window_bounds = array<i64: 8, 7>}, {pipeline_mode = #tpu.pipeline_mode<synchronous>, transform_indices = @transform_1, window_bounds = array<i64: 128, 128>}, {pipeline_mode = #tpu.pipeline_mode<synchronous>, transform_indices = @transform_2, window_bounds = array<i64: 4, 128>}, {pipeline_mode = #tpu.pipeline_mode<synchronous>, transform_indices = @transform_3, window_bounds = array<i64: 1, 128>}, {transform_indices = @transform_4, window_bounds = array<i64: 8, 128>}]} {
    %c0 = arith.constant 0 : index
    %c0_0 = arith.constant 0 : index
    %0 = vector.load %arg1[%c0, %c0_0] : memref<8x7xf32, #tpu.memory_space<vmem>>, vector<8x7xf32>
    %1 = tpu.iota {dimensions = array<i32: 1>} : vector<8x128xi32>
    %2 = vector.extract_strided_slice %0 {offsets = [0, 0], sizes = [8, 1], strides = [1, 1]} : vector<8x7xf32> to vector<8x1xf32>
    %3 = math.roundeven %2 : vector<8x1xf32>
    %4 = arith.fptosi %3 : vector<8x1xf32> to vector<8x1xi32>
    %c0_i32 = arith.constant 0 : i32
    %5 = vector.broadcast %c0_i32 : i32 to vector<8x1xi32>
    %6 = arith.addi %4, %5 : vector<8x1xi32>
    %7 = vector.broadcast %6 : vector<8x1xi32> to vector<8x128xi32>
    %8 = arith.cmpi eq, %1, %7 : vector<8x128xi32>
    %9 = vector.extract_strided_slice %0 {offsets = [0, 1], sizes = [8, 1], strides = [1, 1]} : vector<8x7xf32> to vector<8x1xf32>
    %10 = math.roundeven %9 : vector<8x1xf32>
    %11 = arith.fptosi %10 : vector<8x1xf32> to vector<8x1xi32>
    %c5_i32 = arith.constant 5 : i32
    %12 = vector.broadcast %c5_i32 : i32 to vector<8x1xi32>
    %13 = arith.addi %11, %12 : vector<8x1xi32>
    %14 = vector.broadcast %13 : vector<8x1xi32> to vector<8x128xi32>
    %15 = arith.cmpi eq, %1, %14 : vector<8x128xi32>
    %16 = arith.ori %8, %15 : vector<8x128xi1>
    %17 = vector.extract_strided_slice %0 {offsets = [0, 2], sizes = [8, 1], strides = [1, 1]} : vector<8x7xf32> to vector<8x1xf32>
    %18 = math.roundeven %17 : vector<8x1xf32>
    %19 = arith.fptosi %18 : vector<8x1xf32> to vector<8x1xi32>
    %c12_i32 = arith.constant 12 : i32
    %20 = vector.broadcast %c12_i32 : i32 to vector<8x1xi32>
    %21 = arith.addi %19, %20 : vector<8x1xi32>
    %22 = vector.broadcast %21 : vector<8x1xi32> to vector<8x128xi32>
    %23 = arith.cmpi eq, %1, %22 : vector<8x128xi32>
    %24 = arith.ori %16, %23 : vector<8x128xi1>
    %25 = arith.extui %24 : vector<8x128xi1> to vector<8x128xi32>
    %26 = arith.sitofp %25 : vector<8x128xi32> to vector<8x128xf32>
    %c0_1 = arith.constant 0 : index
    %c0_2 = arith.constant 0 : index
    %27 = vector.load %arg2[%c0_1, %c0_2] : memref<128x128xf32, #tpu.memory_space<vmem>>, vector<128x128xf32>
    %cst = arith.constant dense<0.000000e+00> : vector<8x128xf32>
    %28 = tpu.matmul %26, %27, %cst {dimension_numbers = #tpu.dot_dimension_numbers<[1], [0], [0], [1], [0, 0, 1, 1], [], []>} : vector<8x128xf32>, vector<128x128xf32>, vector<8x128xf32> -> vector<8x128xf32>
    %29 = vector.extract_strided_slice %0 {offsets = [0, 3], sizes = [8, 4], strides = [1, 1]} : vector<8x7xf32> to vector<8x4xf32>
    %c0_3 = arith.constant 0 : index
    %c0_4 = arith.constant 0 : index
    %30 = vector.load %arg3[%c0_3, %c0_4] : memref<4x128xf32, #tpu.memory_space<vmem>>, vector<4x128xf32>
    %cst_5 = arith.constant dense<0.000000e+00> : vector<8x128xf32>
    %31 = tpu.matmul %29, %30, %cst_5 {dimension_numbers = #tpu.dot_dimension_numbers<[1], [0], [0], [1], [0, 0, 1, 1], [], []>} : vector<8x4xf32>, vector<4x128xf32>, vector<8x128xf32> -> vector<8x128xf32>
    %32 = arith.addf %28, %31 : vector<8x128xf32>
    %c0_6 = arith.constant 0 : index
    %c0_7 = arith.constant 0 : index
    %33 = vector.load %arg4[%c0_6, %c0_7] : memref<1x128xf32, #tpu.memory_space<vmem>>, vector<1x128xf32>
    %34 = vector.broadcast %33 : vector<1x128xf32> to vector<8x128xf32>
    %35 = arith.addf %32, %34 : vector<8x128xf32>
    %c0_8 = arith.constant 0 : index
    %c0_9 = arith.constant 0 : index
    %36 = vector.load %arg5[%c0_8, %c0_9] : memref<8x128xf32, #tpu.memory_space<vmem>>, vector<8x128xf32>
    tpu.vector_store %arg5[%c0_8, %c0_9], %35 {strides = array<i32>} : memref<8x128xf32, #tpu.memory_space<vmem>>, vector<8x128xf32>,
    return
  }
  func.func @transform_0(%arg0: i32) -> (i32, i32) {
    %c0_i32 = arith.constant 0 : i32
    %c0_i32_0 = arith.constant 0 : i32
    return %arg0, %c0_i32 : i32, i32
  }
  func.func @transform_1(%arg0: i32) -> (i32, i32) {
    %c0_i32 = arith.constant 0 : i32
    %c0_i32_0 = arith.constant 0 : i32
    %c0_i32_1 = arith.constant 0 : i32
    return %c0_i32, %c0_i32_0 : i32, i32
  }
  func.func @transform_2(%arg0: i32) -> (i32, i32) {
    %c0_i32 = arith.constant 0 : i32
    %c0_i32_0 = arith.constant 0 : i32
    %c0_i32_1 = arith.constant 0 : i32
    return %c0_i32, %c0_i32_0 : i32, i32
  }
  func.func @transform_3(%arg0: i32) -> (i32, i32) {
    %c0_i32 = arith.constant 0 : i32
    %c0_i32_0 = arith.constant 0 : i32
    %c0_i32_1 = arith.constant 0 : i32
    return %c0_i32, %c0_i32_0 : i32, i32
  }
  func.func @transform_4(%arg0: i32) -> (i32, i32) {
    %c0_i32 = arith.constant 0 : i32
    %c0_i32_0 = arith.constant 0 : i32
    return %arg0, %c0_i32 : i32, i32
  }
}

</mosaic_0001>

<bundles_post_ra>
// kernel: _forward.1
= control target key start
LH: loop header
LB: loop body
LE: loop exit
PB: predicated region body
PF: predicated region fallthrough
CT: control target
= control target key end

     0   :  { %9 = vsyncpa [#allocation3], 0  ;;  %s525_s0 = inlined_call_operand.hbm [shape: f32[8,7], index: 0, kind: input, shape index: {}]   ;;  %s526_s1 = inlined_call_operand.hbm [shape: f32[128,128], index: 1, kind: input, shape index: {}]   ;;  %s527_s2 = inlined_call_operand.vmem [shape: f32[4,128], index: 2, kind: input, shape index: {}]   ;;  %s528_s3 = inlined_call_operand.vmem [shape: f32[1,128], index: 3, kind: input, shape index: {}]   ;;  %s529_s4 = inlined_call_operand.hbm [shape: f32[8,128], index: 4, kind: output, shape index: {}]  }
   0x1   :  { %10 = vsyncpa [#allocation6], 0 }
   0x2   :  { %11 = vsyncpa [#allocation4], 0  ;;  %s438_s15 = smov [#allocation2]   ;;  %s439_s17 = smov [#allocation5]  }
   0x3   :  { %s18_s16 = sshll.u32 %s438_s15, 4  ;;  %s27_s18 = sshll.u32 %s439_s17, 4  ;;  %s19_s16 = int_to_ptr.vmem [resolvable:$true] %s18_s16  ;;  %s476_s18 = int_to_ptr.vmem [resolvable:$true] %s27_s18 }
   0x4   :  { %s366_s21 = scalar_lea.hbm %s525_s0, 128 }
   0x5   :  { %p367_p0 = scmp.ne.s32.totalorder %s525_s0, %s366_s21  ;;  %p370_p1 = scmp.lt.u32.totalorder %s366_s21, %s525_s0 }
   0x7   :  { %p372_p2 = pnand %p370_p1, %p367_p0 }
   0x9   :  { %375 = shalt.err (!%p372_p2)
}
   0xa   :  { %s376_s26 = scalar_lea.vmem %s19_s16, 128  ;;  %p381_p4 = scmp.lt.s32.totalorder %s19_s16, %s19_s16 }
   0xb   :  { %p377_p3 = scmp.ne.s32.totalorder %s19_s16, %s376_s26  ;;  %p382_p5 = scmp.lt.s32.totalorder %s376_s26, %s376_s26 }
   0xd   :  { %p383_p6 = por %p382_p5, %p381_p4 }
   0xf   :  { %p384_p7 = pnand %p383_p6, %p377_p3 }
  0x11   :  { %387 = shalt.err (!%p384_p7)
}
  0x12   :  { %21 = dma.hbm_to_vmem [thread:$0]  %s525_s0, 128, %s19_s16, [#allocation3]  }
  0x13   :  { %s388_s5 = scalar_lea.hbm %s526_s1, 2048 }
  0x14   :  { %p389_p8 = scmp.ne.s32.totalorder %s526_s1, %s388_s5  ;;  %p392_p9 = scmp.lt.u32.totalorder %s388_s5, %s526_s1 }
  0x16   :  { %p394_p10 = pnand %p392_p9, %p389_p8 }
  0x18   :  { %397 = shalt.err (!%p394_p10)
}
  0x19   :  { %s398_s10 = scalar_lea.vmem %s476_s18, 2048  ;;  %p403_p12 = scmp.lt.s32.totalorder %s476_s18, %s476_s18 }
  0x1a   :  { %p399_p11 = scmp.ne.s32.totalorder %s476_s18, %s398_s10  ;;  %p404_p13 = scmp.lt.s32.totalorder %s398_s10, %s398_s10 }
  0x1c   :  { %p405_p0 = por %p404_p13, %p403_p12 }
  0x1e   :  { %p406_p1 = pnand %p405_p0, %p399_p11 }
  0x20   :  { %409 = shalt.err (!%p406_p1)
}
  0x21   :  { %s440_s0 = smov 128   ;;  %s441_s11 = smov 8  }
  0x22   :  { %33 = dma.hbm_to_vmem [thread:$0]  %s526_s1, 2048, %s476_s18, [#allocation6], %s440_s0, %s440_s0, %s441_s11  }
  0x23   :  { %432 = dma.done.wait [#allocation3], 128  }
  0x24   :  { %433 = vsyncadd [#allocation3], 4294967168 }
  0x25   :  { %434 = dma.done.wait [#allocation6], 2048  }
  0x26   :  { %435 = vsyncadd [#allocation6], 4294965248  ;;  %v442_v0 = vmov 0   ;;  %v443_v1 = vmov 2   ;;  %v444_v2 = vmov 0.0|0.0   ;;  %v44_v3 = vld [vmem:[#allocation2] sm:$0xff]  ;;  %v45_v34 = vlaneseq }
  0x27   :  { %362 = vset.pattern.permute.xlu0 %v442_v0  ;;  %364 = vset.pattern.permute.xlu1 %v443_v1  ;;  %v66_v4 = vld [vmem:[#allocation5] sm:$0xff]  ;;  %v67_v5 = vld [vmem:[#allocation5 + $0x8] sm:$0xff]  ;;  %v348_v6 = vcvt.f32.s32 %v44_v3  ;;  %v68_v8 = vld [vmem:[#allocation5 + $0x10] sm:$0xff]  ;;  %v445_v15 = vmov 1   ;;  %vm89_vm0 = vcmask 1043456   ;;  %s446_s15 = smov 125  }
  0x28   :  { %322 = vmatprep.subr.bf16.mxu1 %v444_v2  ;;  %v323_v7 = vpack.c.bf16 %v67_v5, %v66_v4  ;;  %v69_v9 = vld [vmem:[#allocation5 + $0x18] sm:$0xff]  ;;  %v70_v13 = vld [vmem:[#allocation5 + $0x20] sm:$0xff]  ;;  %v71_v14 = vld [vmem:[#allocation5 + $0x28] sm:$0xff]  ;;  %v447_v20 = vmov 0.0   ;;  %vm448_vm1 = vmmov 0   ;;  %v46_v36 = vand.u32 127, %v45_v34 }
  0x29   :  { %49 = vperm.xlu0 %362, %v348_v6   ;;  %v58_v10 = vadd.s32 12, %v348_v6  ;;  %v326_v11 = vpack.c.bf16 %v69_v9, %v68_v8  ;;  %v52_v12 = vadd.s32 5, %v348_v6  ;;  %v329_v16 = vpack.c.bf16 %v71_v14, %v70_v13  ;;  %v72_v17 = vld [vmem:[#allocation5 + $0x30] sm:$0xff]  ;;  %v73_v18 = vld [vmem:[#allocation5 + $0x38] sm:$0xff]  ;;  %282 = vmatprep.subr.mxu0 %v447_v20  ;;  %v74_v22 = vld [vmem:[#allocation5 + $0x40] sm:$0xff]  ;;  %s450_s17 = smov [#allocation7]  }
  0x2a   :  { %324 = vmatpush3.bf16.msra.mxu1 %v323_v7  ;;  %v82_v19 = vld [vmem:[%s527_s2] sm:$0xf]  ;;  %284 = vmatprep.mubr.msk.f32.mxu0 %vm448_vm1, %v447_v20  ;;  %v332_v21 = vpack.c.bf16 %v73_v18, %v72_v17  ;;  %v75_v23 = vld [vmem:[#allocation5 + $0x48] sm:$0xff]  ;;  %v76_v25 = vld [vmem:[#allocation5 + $0x50] sm:$0xff]  ;;  %vm86_vm2 = vcmask 31744   ;;  %v449_v40 = vmov 1.0  }
  0x2b   :  { %325 = vmatprep.subr.bf16.mxu1 %v444_v2  ;;  %60 = vperm.xlu1 %364, %v58_v10   ;;  %v335_v24 = vpack.c.bf16 %v75_v23, %v74_v22  ;;  %v77_v26 = vld [vmem:[#allocation5 + $0x58] sm:$0xff]  ;;  %v78_v28 = vld [vmem:[#allocation5 + $0x60] sm:$0xff]  ;;  %v79_v29 = vld [vmem:[#allocation5 + $0x68] sm:$0xff]  ;;  %s248_s18 = sshll.u32 %s450_s17, 4  ;;  %s249_s18 = int_to_ptr.vmem [resolvable:$true] %s248_s18 }
  0x2c   :  { %283 = vmatpush3.msk.msra.mxu0 %vm89_vm0, %v82_v19  ;;  %319 = vmatprep.mubr.msk.f32.mxu1 %vm448_vm1, %v447_v20  ;;  %v338_v27 = vpack.c.bf16 %v77_v26, %v76_v25  ;;  %v341_v30 = vpack.c.bf16 %v79_v29, %v78_v28  ;;  %v80_v31 = vld [vmem:[#allocation5 + $0x70] sm:$0xff]  ;;  %v81_v32 = vld [vmem:[#allocation5 + $0x78] sm:$0xff]  ;;  %s410_s19 = scalar_lea.vmem %s249_s18, 128  ;;  %p415_p3 = scmp.lt.s32.totalorder %s249_s18, %s249_s18 }
  0x2d   :  { %363 = vset.pattern.permute.xlu0 %v445_v15  ;;  %v344_v33 = vpack.c.bf16 %v81_v32, %v80_v31  ;;  %v262_v44 = vld [vmem:[%s528_s3] ss:$0 sm:$0xff]  ;;  %p411_p2 = scmp.ne.s32.totalorder %s249_s18, %s410_s19  ;;  %p416_p4 = scmp.lt.s32.totalorder %s410_s19, %s410_s19 }
  0x2e   :  { %327 = vmatpush3.bf16.msra.mxu1 %v326_v11  ;;  %54 = vperm.xlu0 %363, %v52_v12  }
  0x2f   :  { %328 = vmatprep.subr.bf16.mxu1 %v444_v2  ;;  %84 = vrot.lane.b32.xlu1 %v44_v3, %s446_s15  ;;  %p417_p5 = por %p416_p4, %p415_p3 }
  0x31   :  { %p418_p6 = pnand %p417_p5, %p411_p2 }
  0x32   :  { %330 = vmatpush3.bf16.msra.mxu1 %v329_v16  ;;  %365 = vset.pattern.permute.xlu0 %v443_v1 }
  0x33   :  { %331 = vmatprep.subr.bf16.mxu1 %v444_v2 }
  0x36   :  { %333 = vmatpush3.bf16.msra.mxu1 %v332_v21 }
  0x37   :  { %334 = vmatprep.subr.bf16.mxu1 %v444_v2 }
  0x3a   :  { %336 = vmatpush3.bf16.msra.mxu1 %v335_v24 }
  0x3b   :  { %337 = vmatprep.subr.bf16.mxu1 %v444_v2 }
  0x3e   :  { %339 = vmatpush3.bf16.msra.mxu1 %v338_v27 }
  0x3f   :  { %340 = vmatprep.subr.bf16.mxu1 %v444_v2 }
  0x42   :  { %342 = vmatpush3.bf16.msra.mxu1 %v341_v30 }
  0x43   :  { %343 = vmatprep.subr.bf16.mxu1 %v444_v2 }
  0x46   :  { %345 = vmatpush3.bf16.msra.mxu1 %v344_v33 }
  0xa8   :  { %v50_v35 = vpop.permute.xlu0 %49 }
  0xa9   :  { %vm51_vm3 = vcmp.eq.s32.totalorder %v46_v36, %v50_v35 }
  0xaa   :  { %v61_v37 = vpop.permute.xlu1 %60 }
  0xab   :  { %vm62_vm5 = vcmp.eq.s32.totalorder %v46_v36, %v61_v37 }
  0xad   :  { %v55_v38 = vpop.permute.xlu0 %54 }
  0xae   :  { %vm56_vm4 = vcmp.eq.s32.totalorder %v46_v36, %v55_v38  ;;  %v85_v39 = vpop.permute.xlu1 %84 }
  0xaf   :  { %vm57_vm6 = vmor %vm51_vm3, %vm56_vm4  ;;  %285 = vmatmul.mubr.msk.f32.vlgmr.msra.gmra.mrb[0].mxu0 %vm86_vm2, %v85_v39 }
  0xb0   :  { %vm63_vm7 = vmor %vm57_vm6, %vm62_vm5 }
  0xb1   :  { %320 = vmatmul.mubr.msk.f32.vlgmr.msra.gmra.mrb[0].mxu1 %vm63_vm7, %v449_v40 }
 0x182   :  { %v159_v41 = vpop.f32.mrb[0].mxu0 }
 0x183   :  { %v286_v42 = vpop.f32.mrb[1].mxu0 }
 0x184   :  { %v229_v43 = vpop.f32.mrb[0].mxu1 }
 0x185   :  { %v230_v45 = vadd.f32 %v229_v43, %v159_v41  ;;  %v321_v46 = vpop.f32.mrb[1].mxu1 }
 0x187   :  { %v240_v47 = vadd.f32 %v262_v44, %v230_v45 }
 0x189   :  { %241 = vst [vmem:[#allocation7] sm:$0xff] %v240_v47 }
 0x18a   :  { %421 = shalt.err (!%p418_p6)
}
 0x18b   :  { %s422_s22 = scalar_lea.hbm %s529_s4, 128 }
 0x18c   :  { %p423_p7 = scmp.ne.s32.totalorder %s529_s4, %s422_s22  ;;  %p426_p8 = scmp.lt.u32.totalorder %s422_s22, %s529_s4 }
 0x18e   :  { %p428_p9 = pnand %p426_p8, %p423_p7 }
 0x190   :  { %431 = shalt.err (!%p428_p9)
}
 0x191   :  { %251 = dma.vmem_to_hbm [thread:$0]  %s249_s18, 128, %s529_s4, [#allocation4]  }
 0x192   :  { %436 = dma.done.wait [#allocation4], 128  }
 0x193   :  { %437 = vsyncadd [#allocation4], 4294967168 }
 0x194   :  { %255 = vsyncpa [#allocation3], 1 }
 0x195   :  { %256 = vsyncpa [#allocation6], 1 }
 0x196   :  { %257 = vsyncpa [#allocation4], 1 }

</bundles_post_ra>
